<compile_context>
chip_gen: v7x
topology: tpu7x:2x2x1
jax: 0.10.0
libtpu: 0.0.40
codegen_flags: <defaults>
</compile_context>

<pallas_src>
import math

import jax
import jax.numpy as jnp
from jax.experimental import pallas as pl
from jax.experimental.pallas import tpu as pltpu


_GELU_C = math.sqrt(2.0 / math.pi)


def _round_up(n: int, m: int) -> int:
    return ((n + m - 1) // m) * m


# ----------------------------------------------------------------------------
# Kernel: one (bm, C) row-slab per grid step, fully fused MLP.
# ----------------------------------------------------------------------------
def mlp_kernel(x_ref, wfc_ref, bfc_ref, wproj_ref, bproj_ref, o_ref):
    x = x_ref[...]                                                  # (bm, C)  bf16

    # c_fc: (bm, C) @ (C, Hp) -> f32 accumulation on the MXU, f32 bias on the VPU.
    h = jnp.dot(x, wfc_ref[...], preferred_element_type=jnp.float32) + bfc_ref[...]

    # GELU, tanh approximation (== torch.nn.GELU(approximate='tanh')), kept in f32
    # (v5e has no bf16 VPU/EUP path).  tanh goes to the EUP slot, FMAs stay on VPU.
    g = 0.5 * h * (1.0 + jnp.tanh(_GELU_C * (h + 0.044715 * (h * h * h))))

    # c_proj: cast back to bf16 for the MXU, f32 accumulation, f32 bias.
    g = g.astype(wproj_ref.dtype)
    out = jnp.dot(g, wproj_ref[...], preferred_element_type=jnp.float32) + bproj_ref[...]

    o_ref[...] = out.astype(o_ref.dtype)
    # TODO(synk): train-mode stochastic dropout (nn.Dropout) not implemented;
    # eval mode is an identity, which is what this kernel computes.


# ----------------------------------------------------------------------------
# One-time parameter prep (hoisted out of the per-call path).
# ----------------------------------------------------------------------------
def prepare_mlp_params(w_fc, b_fc, w_proj, b_proj, *, matmul_dtype=jnp.bfloat16):
    """PyTorch-layout params in, MXU-ready params out.

    w_fc: (H, C) = c_fc.weight   b_fc: (H,)
    w_proj: (C, H) = c_proj.weight   b_proj: (C,)
    Weights are pre-transposed, cast to bf16, and zero-padded so the hidden and
    output channel dims are multiples of 128 (lane-dense); biases stay f32.
    """
    H, C = w_fc.shape
    Hp = _round_up(H, 128)
    Cp = _round_up(C, 128)

    w_fc_t = jnp.zeros((C, Hp), matmul_dtype).at[:, :H].set(w_fc.T.astype(matmul_dtype))
    b_fc_p = jnp.zeros((1, Hp), jnp.float32).at[:, :H].set(
        b_fc.astype(jnp.float32)[None, :])
    w_proj_t = jnp.zeros((Hp, Cp), matmul_dtype).at[:H, :C].set(
        w_proj.T.astype(matmul_dtype))
    b_proj_p = jnp.zeros((1, Cp), jnp.float32).at[:, :C].set(
        b_proj.astype(jnp.float32)[None, :])

    return dict(w_fc_t=w_fc_t, b_fc=b_fc_p, w_proj_t=w_proj_t, b_proj=b_proj_p,
                C=C, H=H, Hp=Hp, Cp=Cp, matmul_dtype=matmul_dtype)


# ----------------------------------------------------------------------------
# Wrapper: fold leading dims into M, tile rows, single fused pallas_call.
# ----------------------------------------------------------------------------
def mlp_pallas(x, params, *, block_m=256):
    """x: (..., C) -> (..., C): c_fc -> GELU(tanh) -> c_proj (+ eval-mode dropout)."""
    C, H = params["C"], params["H"]
    Hp, Cp = params["Hp"], params["Cp"]
    mm_dtype = params["matmul_dtype"]
    assert x.shape[-1] == C

    orig_shape = x.shape
    out_dtype = x.dtype
    M = 1
    for d in orig_shape[:-1]:
        M *= d

    # Fold all leading (batch, seq) dims into the matmul row dim; bf16 for the MXU.
    x2 = x.reshape(M, C).astype(mm_dtype)

    # Row-block size: 256-row slabs for large M (MXU-tile aligned on all gens),
    # multiples of 16 (bf16 sublane packing) for small M.  The last block may be
    # ragged; Pallas masks its edge loads/stores — no host-side pad of x.
    bm = min(block_m, _round_up(M, 16))
    n_blocks = pl.cdiv(M, bm)

    # VMEM budget: resident weights + double-buffered x/out slabs + intermediates,
    # clamped to v7x's 64 MiB/TC (on v6e/v5e this could be raised further; for
    # very large C/H switch to an H-chunked accumulator grid instead).
    w_isize = jnp.dtype(mm_dtype).itemsize
    o_isize = jnp.dtype(out_dtype).itemsize
    vmem_needed = (
        2 * (C * Hp + Hp * Cp) * w_isize            # resident weights (2 bufs each)
        + 2 * bm * C * w_isize                      # x slab, double buffered
        + 2 * bm * Cp * o_isize                     # out slab, double buffered
        + 2 * (Hp + Cp) * 4                         # biases
        + bm * Hp * (4 + w_isize) + bm * Cp * 4     # h (f32), g (bf16), out (f32)
    )
    vmem_limit = int(min(64 * 1024 * 1024, max(2 * vmem_needed, 16 * 1024 * 1024)))

    cost = pl.CostEstimate(
        flops=4 * M * C * H + 10 * M * H,
        transcendentals=M * H,
        bytes_accessed=(M * C * w_isize + (C * Hp + Hp * Cp) * w_isize
                        + M * Cp * o_isize),
    )

    out2 = pl.pallas_call(
        mlp_kernel,
        out_shape=jax.ShapeDtypeStruct((M, Cp), out_dtype),
        grid=(n_blocks,),
        in_specs=[
            pl.BlockSpec((bm, C), lambda i: (i, 0)),     # x row-slab (streamed)
            pl.BlockSpec((C, Hp), lambda i: (0, 0)),     # c_fc weight (VMEM-resident)
            pl.BlockSpec((1, Hp), lambda i: (0, 0)),     # c_fc bias (f32)
            pl.BlockSpec((Hp, Cp), lambda i: (0, 0)),    # c_proj weight (VMEM-resident)
            pl.BlockSpec((1, Cp), lambda i: (0, 0)),     # c_proj bias (f32)
        ],
        out_specs=pl.BlockSpec((bm, Cp), lambda i: (i, 0)),
        compiler_params=pltpu.CompilerParams(
            dimension_semantics=("parallel",),           # shard row blocks across TCs
            vmem_limit_bytes=vmem_limit,
        ),
        cost_estimate=cost,
    )(x2, params["w_fc_t"], params["b_fc"], params["w_proj_t"], params["b_proj"])

    if Cp != C:
        out2 = out2[:, :C]              # drop lane-padding columns (exact zeros)
    return out2.reshape(orig_shape)


# ----------------------------------------------------------------------------
# Pure-JAX (f32) reference mirroring the PyTorch forward in eval mode.
# ----------------------------------------------------------------------------
def reference(x, w_fc, b_fc, w_proj, b_proj):
    h = x @ w_fc.T + b_fc
    g = 0.5 * h * (1.0 + jnp.tanh(_GELU_C * (h + 0.044715 * h ** 3)))
    return g @ w_proj.T + b_proj


# ----------------------------------------------------------------------------
if __name__ == "__main__":
    B, T, C = 2, 8, 32          # batch=2, seq=8, n_embd=32
    H = 4 * C                   # hidden = 128

    key = jax.random.PRNGKey(0)
    k1, k2, k3, k4, k5 = jax.random.split(key, 5)
    x = jax.random.normal(k1, (B, T, C), dtype=jnp.float32)
    w_fc = 0.02 * jax.random.normal(k2, (H, C), dtype=jnp.float32)    # nn.Linear(C, 4C).weight
    b_fc = 0.01 * jax.random.normal(k3, (H,), dtype=jnp.float32)
    w_proj = 0.02 * jax.random.normal(k4, (C, H), dtype=jnp.float32)  # nn.Linear(4C, C).weight
    b_proj = 0.01 * jax.random.normal(k5, (C,), dtype=jnp.float32)

    params = prepare_mlp_params(w_fc, b_fc, w_proj, b_proj)

    out = jax.block_until_ready(mlp_pallas(x, params))
    ref = reference(x, w_fc, b_fc, w_proj, b_proj)
    assert out.shape == (B, T, C)
    # bf16 matmul operands with f32 accumulation -> compare loosely vs f32 reference.
    assert jnp.allclose(out, ref, atol=5e-3, rtol=5e-2), "mismatch vs pure-JAX reference"

    # Extra check: multi-block grid with a ragged last row-block (M=600, bm=256).
    x_big = jax.random.normal(jax.random.PRNGKey(1), (3, 200, C), dtype=jnp.float32)
    out_big = jax.block_until_ready(mlp_pallas(x_big, params))
    ref_big = reference(x_big, w_fc, b_fc, w_proj, b_proj)
    assert jnp.allclose(out_big, ref_big, atol=5e-3, rtol=5e-2), "mismatch on ragged grid"

    print("KERNEL_OK")
</pallas_src>

<mosaic_0001>
module attributes {stable_mosaic.version = 11 : i64} {
  func.func @mlp_kernel(%arg0: i32, %arg1: memref<16x32xbf16, #tpu.memory_space<vmem>>, %arg2: memref<32x128xbf16, #tpu.memory_space<vmem>>, %arg3: memref<1x128xf32, #tpu.memory_space<vmem>>, %arg4: memref<128x128xbf16, #tpu.memory_space<vmem>>, %arg5: memref<1x128xf32, #tpu.memory_space<vmem>>, %arg6: memref<16x128xf32, #tpu.memory_space<vmem>>) attributes {dimension_semantics = [#tpu.dimension_semantics<parallel>], iteration_bounds = array<i64: 1>, scalar_prefetch = 0 : i64, scratch_operands = 0 : i64, tpu.core_type = #tpu.core_type<tc>, window_params = [{transform_indices = @transform_0, window_bounds = array<i64: 16, 32>}, {pipeline_mode = #tpu.pipeline_mode<synchronous>, transform_indices = @transform_1, window_bounds = array<i64: 32, 128>}, {pipeline_mode = #tpu.pipeline_mode<synchronous>, transform_indices = @transform_2, window_bounds = array<i64: 1, 128>}, {pipeline_mode = #tpu.pipeline_mode<synchronous>, transform_indices = @transform_3, window_bounds = array<i64: 128, 128>}, {pipeline_mode = #tpu.pipeline_mode<synchronous>, transform_indices = @transform_4, window_bounds = array<i64: 1, 128>}, {transform_indices = @transform_5, window_bounds = array<i64: 16, 128>}]} {
    %c0 = arith.constant 0 : index
    %c0_0 = arith.constant 0 : index
    %0 = vector.load %arg1[%c0, %c0_0] : memref<16x32xbf16, #tpu.memory_space<vmem>>, vector<16x32xbf16>
    %c0_1 = arith.constant 0 : index
    %c0_2 = arith.constant 0 : index
    %1 = vector.load %arg2[%c0_1, %c0_2] : memref<32x128xbf16, #tpu.memory_space<vmem>>, vector<32x128xbf16>
    %cst = arith.constant dense<0.000000e+00> : vector<16x128xf32>
    %2 = tpu.matmul %0, %1, %cst {dimension_numbers = #tpu.dot_dimension_numbers<[1], [0], [0], [1], [0, 0, 1, 1], [], []>} : vector<16x32xbf16>, vector<32x128xbf16>, vector<16x128xf32> -> vector<16x128xf32>
    %c0_3 = arith.constant 0 : index
    %c0_4 = arith.constant 0 : index
    %3 = vector.load %arg3[%c0_3, %c0_4] : memref<1x128xf32, #tpu.memory_space<vmem>>, vector<1x128xf32>
    %4 = vector.broadcast %3 : vector<1x128xf32> to vector<16x128xf32>
    %5 = arith.addf %2, %4 : vector<16x128xf32>
    %cst_5 = arith.constant 5.000000e-01 : f32
    %6 = vector.broadcast %cst_5 : f32 to vector<16x128xf32>
    %7 = arith.mulf %6, %5 : vector<16x128xf32>
    %8 = arith.mulf %5, %5 : vector<16x128xf32>
    %9 = arith.mulf %8, %5 : vector<16x128xf32>
    %cst_6 = arith.constant 4.471500e-02 : f32
    %10 = vector.broadcast %cst_6 : f32 to vector<16x128xf32>
    %11 = arith.mulf %10, %9 : vector<16x128xf32>
    %12 = arith.addf %5, %11 : vector<16x128xf32>
    %cst_7 = arith.constant 0.797884583 : f32
    %13 = vector.broadcast %cst_7 : f32 to vector<16x128xf32>
    %14 = arith.mulf %13, %12 : vector<16x128xf32>
    %15 = math.tanh %14 : vector<16x128xf32>
    %cst_8 = arith.constant 1.000000e+00 : f32
    %16 = vector.broadcast %cst_8 : f32 to vector<16x128xf32>
    %17 = arith.addf %16, %15 : vector<16x128xf32>
    %18 = arith.mulf %7, %17 : vector<16x128xf32>
    %19 = arith.truncf %18 : vector<16x128xf32> to vector<16x128xbf16>
    %c0_9 = arith.constant 0 : index
    %c0_10 = arith.constant 0 : index
    %20 = vector.load %arg4[%c0_9, %c0_10] : memref<128x128xbf16, #tpu.memory_space<vmem>>, vector<128x128xbf16>
    %cst_11 = arith.constant dense<0.000000e+00> : vector<16x128xf32>
    %21 = tpu.matmul %19, %20, %cst_11 {dimension_numbers = #tpu.dot_dimension_numbers<[1], [0], [0], [1], [0, 0, 1, 1], [], []>} : vector<16x128xbf16>, vector<128x128xbf16>, vector<16x128xf32> -> vector<16x128xf32>
    %c0_12 = arith.constant 0 : index
    %c0_13 = arith.constant 0 : index
    %22 = vector.load %arg5[%c0_12, %c0_13] : memref<1x128xf32, #tpu.memory_space<vmem>>, vector<1x128xf32>
    %23 = vector.broadcast %22 : vector<1x128xf32> to vector<16x128xf32>
    %24 = arith.addf %21, %23 : vector<16x128xf32>
    %c0_14 = arith.constant 0 : index
    %c0_15 = arith.constant 0 : index
    %25 = vector.load %arg6[%c0_14, %c0_15] : memref<16x128xf32, #tpu.memory_space<vmem>>, vector<16x128xf32>
    tpu.vector_store %arg6[%c0_14, %c0_15], %24 {strides = array<i32>} : memref<16x128xf32, #tpu.memory_space<vmem>>, vector<16x128xf32>,
    return
  }
  func.func @transform_0(%arg0: i32) -> (i32, i32) {
    %c0_i32 = arith.constant 0 : i32
    %c0_i32_0 = arith.constant 0 : i32
    return %arg0, %c0_i32 : i32, i32
  }
  func.func @transform_1(%arg0: i32) -> (i32, i32) {
    %c0_i32 = arith.constant 0 : i32
    %c0_i32_0 = arith.constant 0 : i32
    %c0_i32_1 = arith.constant 0 : i32
    return %c0_i32, %c0_i32_0 : i32, i32
  }
  func.func @transform_2(%arg0: i32) -> (i32, i32) {
    %c0_i32 = arith.constant 0 : i32
    %c0_i32_0 = arith.constant 0 : i32
    %c0_i32_1 = arith.constant 0 : i32
    return %c0_i32, %c0_i32_0 : i32, i32
  }
  func.func @transform_3(%arg0: i32) -> (i32, i32) {
    %c0_i32 = arith.constant 0 : i32
    %c0_i32_0 = arith.constant 0 : i32
    %c0_i32_1 = arith.constant 0 : i32
    return %c0_i32, %c0_i32_0 : i32, i32
  }
  func.func @transform_4(%arg0: i32) -> (i32, i32) {
    %c0_i32 = arith.constant 0 : i32
    %c0_i32_0 = arith.constant 0 : i32
    %c0_i32_1 = arith.constant 0 : i32
    return %c0_i32, %c0_i32_0 : i32, i32
  }
  func.func @transform_5(%arg0: i32) -> (i32, i32) {
    %c0_i32 = arith.constant 0 : i32
    %c0_i32_0 = arith.constant 0 : i32
    return %arg0, %c0_i32 : i32, i32
  }
}

</mosaic_0001>

<bundles_post_ra>
// kernel: tpu_custom_call.1
= control target key start
LH: loop header
LB: loop body
LE: loop exit
PB: predicated region body
PF: predicated region fallthrough
CT: control target
= control target key end

     0   :  { %10 = vsyncpa [#allocation3], 0  ;;  %s572_s0 = inlined_call_operand.hbm [shape: bf16[16,32], index: 0, kind: input, shape index: {}]   ;;  %s573_s1 = inlined_call_operand.hbm [shape: bf16[32,128], index: 1, kind: input, shape index: {}]   ;;  %s574_s2 = inlined_call_operand.vmem [shape: f32[1,128], index: 2, kind: input, shape index: {}]   ;;  %s575_s3 = inlined_call_operand.hbm [shape: bf16[128,128], index: 3, kind: input, shape index: {}]   ;;  %s576_s4 = inlined_call_operand.vmem [shape: f32[1,128], index: 4, kind: input, shape index: {}]   ;;  %s577_s5 = inlined_call_operand.hbm [shape: f32[16,128], index: 5, kind: output, shape index: {}]  }
   0x1   :  { %11 = vsyncpa [#allocation6], 0 }
   0x2   :  { %12 = vsyncpa [#allocation4], 0  ;;  %s462_s18 = smov [#allocation5]   ;;  %s463_s20 = smov [#allocation2]  }
   0x3   :  { %s30_s19 = sshll.u32 %s462_s18, 4  ;;  %s18_s21 = sshll.u32 %s463_s20, 4  ;;  %s31_s19 = int_to_ptr.vmem [resolvable:$true] %s30_s19  ;;  %s502_s21 = int_to_ptr.vmem [resolvable:$true] %s18_s21 }
   0x4   :  { %s368_s24 = scalar_lea.hbm %s573_s1, 256 }
   0x5   :  { %p369_p0 = scmp.ne.s32.totalorder %s573_s1, %s368_s24  ;;  %p372_p1 = scmp.lt.u32.totalorder %s368_s24, %s573_s1 }
   0x7   :  { %p374_p2 = pnand %p372_p1, %p369_p0 }
   0x9   :  { %377 = shalt.err (!%p374_p2)
}
   0xa   :  { %s378_s29 = scalar_lea.vmem %s31_s19, 256  ;;  %p383_p4 = scmp.lt.s32.totalorder %s31_s19, %s31_s19 }
   0xb   :  { %p379_p3 = scmp.ne.s32.totalorder %s31_s19, %s378_s29  ;;  %p384_p5 = scmp.lt.s32.totalorder %s378_s29, %s378_s29 }
   0xd   :  { %p385_p6 = por %p384_p5, %p383_p4 }
   0xf   :  { %p386_p7 = pnand %p385_p6, %p379_p3 }
  0x11   :  { %389 = shalt.err (!%p386_p7)
}
  0x12   :  { %s464_s30 = smov 64   ;;  %s465_s6 = smov 4  }
  0x13   :  { %36 = dma.hbm_to_vmem [thread:$0]  %s573_s1, 256, %s31_s19, [#allocation6], %s464_s30, %s464_s30, %s465_s6  }
  0x14   :  { %s390_s11 = scalar_lea.hbm %s572_s0, 128 }
  0x15   :  { %p391_p8 = scmp.ne.s32.totalorder %s572_s0, %s390_s11  ;;  %p394_p9 = scmp.lt.u32.totalorder %s390_s11, %s572_s0 }
  0x17   :  { %p396_p10 = pnand %p394_p9, %p391_p8 }
  0x19   :  { %399 = shalt.err (!%p396_p10)
}
  0x1a   :  { %s400_s16 = scalar_lea.vmem %s502_s21, 128  ;;  %p405_p12 = scmp.lt.s32.totalorder %s502_s21, %s502_s21 }
  0x1b   :  { %p401_p11 = scmp.ne.s32.totalorder %s502_s21, %s400_s16  ;;  %p406_p13 = scmp.lt.s32.totalorder %s400_s16, %s400_s16 }
  0x1d   :  { %p407_p0 = por %p406_p13, %p405_p12 }
  0x1f   :  { %p408_p1 = pnand %p407_p0, %p401_p11 }
  0x21   :  { %411 = shalt.err (!%p408_p1)
}
  0x22   :  { %24 = dma.hbm_to_vmem [thread:$0]  %s572_s0, 128, %s502_s21, [#allocation3], %s464_s30, %s464_s30, %s465_s6  }
  0x23   :  { %s466_s18 = smov [#allocation7]   ;;  %s412_s23 = scalar_lea.hbm %s575_s3, 1024 }
  0x24   :  { %s44_s19 = sshll.u32 %s466_s18, 4  ;;  %p413_p2 = scmp.ne.s32.totalorder %s575_s3, %s412_s23  ;;  %s45_s19 = int_to_ptr.vmem [resolvable:$true] %s44_s19 }
  0x25   :  { %p416_p3 = scmp.lt.u32.totalorder %s412_s23, %s575_s3 }
  0x27   :  { %p418_p4 = pnand %p416_p3, %p413_p2 }
  0x29   :  { %421 = shalt.err (!%p418_p4)
}
  0x2a   :  { %s422_s28 = scalar_lea.vmem %s45_s19, 1024  ;;  %p427_p6 = scmp.lt.s32.totalorder %s45_s19, %s45_s19 }
  0x2b   :  { %p423_p5 = scmp.ne.s32.totalorder %s45_s19, %s422_s28  ;;  %p428_p7 = scmp.lt.s32.totalorder %s422_s28, %s422_s28 }
  0x2d   :  { %p429_p8 = por %p428_p7, %p427_p6 }
  0x2f   :  { %p430_p9 = pnand %p429_p8, %p423_p5 }
  0x31   :  { %433 = shalt.err (!%p430_p9)
}
  0x32   :  { %50 = dma.hbm_to_vmem [thread:$0]  %s575_s3, 1024, %s45_s19, [#allocation6], %s464_s30, %s464_s30, %s465_s6  }
  0x33   :  { %456 = dma.done.wait [#allocation3], 128  }
  0x34   :  { %457 = vsyncadd [#allocation3], 4294967168 }
  0x35   :  { %458 = dma.done.wait [#allocation6], 1280  }
  0x36   :  { %459 = vsyncadd [#allocation6], 4294966016  ;;  %v467_v0 = vmov 0.0   ;;  %vm468_vm0 = vmmov 0   ;;  %v353_v1 = vld [vmem:[#allocation5] sm:$0xff]   ;;  %v354_v2 = vld [vmem:[#allocation5 + $0x8] sm:$0xff]  }
  0x37   :  { %315 = vmatprep.subr.bf16.mxu0 %v467_v0  ;;  %319 = vmatprep.mubr.msk.bf16.mxu0 %vm468_vm0, %v467_v0  ;;  %v355_v3 = vld [vmem:[#allocation2] sm:$0xff]   ;;  %vm93_vm1 = vcmask 261120   ;;  %v356_v4 = vld [vmem:[#allocation7] sm:$0xff]   ;;  %v358_v6 = vld [vmem:[#allocation7 + $0x10] sm:$0xff]   ;;  %s469_s6 = smov [#allocation8]  }
  0x38   :  { %323 = vmatprep.subr.bf16.mxu1 %v467_v0  ;;  %339 = vmatprep.mubr.msk.bf16.mxu1 %vm468_vm0, %v467_v0  ;;  %v357_v5 = vld [vmem:[#allocation7 + $0x8] sm:$0xff]   ;;  %v359_v7 = vld [vmem:[#allocation7 + $0x18] sm:$0xff]   ;;  %v360_v8 = vld [vmem:[#allocation7 + $0x20] sm:$0xff]   ;;  %s276_s7 = sshll.u32 %s469_s6, 4  ;;  %s277_s7 = int_to_ptr.vmem [resolvable:$true] %s276_s7 }
  0x39   :  { %316 = vmatpush3.bf16.msra.mxu0 %v353_v1  ;;  %324 = vmatpush3.bf16.msra.mxu1 %v356_v4  ;;  %v361_v9 = vld [vmem:[#allocation7 + $0x28] sm:$0xff]   ;;  %v362_v10 = vld [vmem:[#allocation7 + $0x30] sm:$0xff]   ;;  %v363_v11 = vld [vmem:[#allocation7 + $0x38] sm:$0xff]   ;;  %s434_s8 = scalar_lea.vmem %s277_s7, 256  ;;  %p439_p11 = scmp.lt.s32.totalorder %s277_s7, %s277_s7 }
  0x3a   :  { %317 = vmatprep.subr.bf16.mxu0 %v467_v0  ;;  %325 = vmatprep.subr.bf16.mxu1 %v467_v0  ;;  %v289_v12 = vld [vmem:[%s574_s2] ss:$0 sm:$0xff]  ;;  %p435_p10 = scmp.ne.s32.totalorder %s277_s7, %s434_s8  ;;  %p440_p12 = scmp.lt.s32.totalorder %s434_s8, %s434_s8 }
  0x3b   :  { %v294_v38 = vld [vmem:[%s576_s4] ss:$0 sm:$0xff] }
  0x3c   :  { %p441_p13 = por %p440_p12, %p439_p11 }
  0x3d   :  { %318 = vmatpush3.bf16.msra.mxu0 %v354_v2  ;;  %326 = vmatpush3.bf16.msra.mxu1 %v357_v5 }
  0x3e   :  { %327 = vmatprep.subr.bf16.mxu1 %v467_v0  ;;  %p442_p0 = pnand %p441_p13, %p435_p10 }
  0x40   :  { %320 = vmatmul.mubr.msk.bf16.vlgmr.msra.gmra.mrb[0].mxu0 %vm93_vm1, %v355_v3 }
  0x41   :  { %328 = vmatpush3.bf16.msra.mxu1 %v358_v6 }
  0x42   :  { %329 = vmatprep.subr.bf16.mxu1 %v467_v0 }
  0x45   :  { %330 = vmatpush3.bf16.msra.mxu1 %v359_v7 }
  0x46   :  { %331 = vmatprep.subr.bf16.mxu1 %v467_v0 }
  0x49   :  { %332 = vmatpush3.bf16.msra.mxu1 %v360_v8 }
  0x4a   :  { %333 = vmatprep.subr.bf16.mxu1 %v467_v0 }
  0x4d   :  { %334 = vmatpush3.bf16.msra.mxu1 %v361_v9 }
  0x4e   :  { %335 = vmatprep.subr.bf16.mxu1 %v467_v0 }
  0x51   :  { %336 = vmatpush3.bf16.msra.mxu1 %v362_v10 }
  0x52   :  { %337 = vmatprep.subr.bf16.mxu1 %v467_v0 }
  0x55   :  { %338 = vmatpush3.bf16.msra.mxu1 %v363_v11 }
 0x113   :  { %v131_v13 = vpop.f32.mrb[0].mxu0 }
 0x114   :  { %v132_v14 = vadd.f32 %v289_v12, %v131_v13  ;;  %v321_v15 = vpop.f32.mrb[1].mxu0 }
 0x115   :  { %v134_v16 = vpop.f32.mrb[2].mxu0 }
 0x116   :  { %v140_v17 = vmul.f32 %v132_v14, %v132_v14  ;;  %v135_v18 = vadd.f32 %v289_v12, %v134_v16  ;;  %v322_v19 = vpop.f32.mrb[3].mxu0  ;;  %v138_v32 = vmul.f32 0.5, %v132_v14 }
 0x118   :  { %v142_v20 = vmul.f32 %v140_v17, %v132_v14  ;;  %v141_v21 = vmul.f32 %v135_v18, %v135_v18  ;;  %v139_v33 = vmul.f32 0.5, %v135_v18 }
 0x11a   :  { %v144_v22 = vmul.f32 0.044715, %v142_v20  ;;  %v143_v23 = vmul.f32 %v141_v21, %v135_v18 }
 0x11c   :  { %v146_v24 = vadd.f32 %v144_v22, %v132_v14  ;;  %v145_v25 = vmul.f32 0.044715, %v143_v23 }
 0x11e   :  { %v148_v26 = vmul.f32 0.7978846, %v146_v24  ;;  %v147_v27 = vadd.f32 %v145_v25, %v135_v18 }
 0x120   :  { %364 = vtanh.f32 %v148_v26  ;;  %v149_v28 = vmul.f32 0.7978846, %v147_v27 }
 0x122   :  { %366 = vtanh.f32 %v149_v28 }
 0x12a   :  { %v365_v29 = vpop.eup %364 }
 0x12b   :  { %v152_v30 = vadd.f32 1.0, %v365_v29 }
 0x12c   :  { %v367_v31 = vpop.eup %366 }
 0x12d   :  { %v153_v34 = vadd.f32 1.0, %v367_v31  ;;  %v154_v35 = vmul.f32 %v152_v30, %v138_v32 }
 0x12f   :  { %v155_v36 = vmul.f32 %v153_v34, %v139_v33 }
 0x131   :  { %v156_v37 = vpack.c.bf16 %v155_v36, %v154_v35 }
 0x133   :  { %340 = vmatmul.mubr.bf16.vlgmr.msra.gmra.mrb[0].mxu1 %v156_v37 }
 0x206   :  { %v262_v39 = vpop.f32.mrb[0].mxu1 }
 0x207   :  { %v263_v40 = vadd.f32 %v294_v38, %v262_v39  ;;  %v341_v41 = vpop.f32.mrb[1].mxu1 }
 0x208   :  { %v265_v42 = vpop.f32.mrb[2].mxu1 }
 0x209   :  { %269 = vst [vmem:[#allocation8] sm:$0xff] %v263_v40  ;;  %v266_v43 = vadd.f32 %v294_v38, %v265_v42  ;;  %v342_v44 = vpop.f32.mrb[3].mxu1 }
 0x20b   :  { %270 = vst [vmem:[#allocation8 + $0x8] sm:$0xff] %v266_v43 }
 0x20c   :  { %445 = shalt.err (!%p442_p0)
}
 0x20d   :  { %s446_s10 = scalar_lea.hbm %s577_s5, 256 }
 0x20e   :  { %p447_p1 = scmp.ne.s32.totalorder %s577_s5, %s446_s10  ;;  %p450_p2 = scmp.lt.u32.totalorder %s446_s10, %s577_s5 }
 0x210   :  { %p452_p3 = pnand %p450_p2, %p447_p1 }
 0x212   :  { %455 = shalt.err (!%p452_p3)
}
 0x213   :  { %s470_s15 = smov 128   ;;  %s471_s16 = smov 8  }
 0x214   :  { %282 = dma.vmem_to_hbm [thread:$0]  %s277_s7, 256, %s577_s5, [#allocation4], %s470_s15, %s470_s15, %s471_s16  }
 0x215   :  { %460 = dma.done.wait [#allocation4], 256  }
 0x216   :  { %461 = vsyncadd [#allocation4], 4294967040 }
 0x217   :  { %286 = vsyncpa [#allocation3], 1 }
 0x218   :  { %287 = vsyncpa [#allocation6], 1 }
 0x219   :  { %288 = vsyncpa [#allocation4], 1 }

</bundles_post_ra>
